<compile_context>
chip_gen: v6e
topology: v6e:2x2x1
jax: 0.10.0
libtpu: 0.0.40
codegen_flags: <defaults>
</compile_context>

<pallas_src>
import math

import jax
import jax.numpy as jnp
from jax.experimental import pallas as pl

# ----- small synthetic config consistent with the module -----
B, S, D = 2, 8, 32          # batch, sequence, model size ("size" in EncoderLayer)
H = 4                       # attention heads
DK = D // H                 # per-head dim
DFF = 64                    # feed-forward hidden dim
EPS = 1e-6

# vec-slab row indices (each row is a 128-lane, zero-padded vector)
_LN1A, _LN1B, _BO, _LN2A, _LN2B, _B2, _B1, _BQKV = range(8)
# w-slab column offsets: [ wqkv (3D) | wo (D) | w1 (DFF) ]
_WQKV0, _WO0, _W10, _WEND = 0, 3 * D, 4 * D, 4 * D + DFF


def _layernorm(x, a, b):
    # torch: a * (x - mean) / (std + eps) + b, std is unbiased (N-1).
    # Exact divide (review): the LN reciprocal scales every output element, so
    # the approx EUP reciprocal is not worth the robustness hit here.
    mean = jnp.mean(x, axis=-1, keepdims=True)
    d = x - mean
    var = jnp.sum(d * d, axis=-1, keepdims=True) * (1.0 / (x.shape[-1] - 1))
    return a * d / (jnp.sqrt(var) + EPS) + b


def encoder_layer_kernel(x_ref, vec_ref, w_ref, w2_ref, o_ref):
    x = x_ref[...]                                   # (B*S, D), flat end-to-end

    # Unpack the small-vector slab with static ref slices (one resident tile).
    ln1a = vec_ref[_LN1A:_LN1A + 1, :D]
    ln1b = vec_ref[_LN1B:_LN1B + 1, :D]
    bo = vec_ref[_BO:_BO + 1, :D]
    ln2a = vec_ref[_LN2A:_LN2A + 1, :D]
    ln2b = vec_ref[_LN2B:_LN2B + 1, :D]
    b2 = vec_ref[_B2:_B2 + 1, :D]
    b1 = vec_ref[_B1:_B1 + 1, :DFF]
    bqkv = vec_ref[_BQKV:_BQKV + 1, :3 * D]

    # ---------- sublayer 0: pre-LN multi-head self-attention + residual ----------
    ln1 = _layernorm(x, ln1a, ln1b)
    # One fused QKV matmul (D -> 3D); 1/sqrt(DK) already folded into wq/bq.
    qkv = jnp.dot(ln1, w_ref[:, _WQKV0:_WO0],
                  preferred_element_type=jnp.float32) + bqkv        # (B*S, 3D)
    qkv3 = qkv.reshape(B, S, 3 * D)   # free view only because S == 8 (f32 sublanes)

    # Head-batched q/k/v: (H*B, S, DK), heads major on the leading (batch) axis.
    def gather_heads(col0):
        return jnp.concatenate(
            [qkv3[:, :, col0 + h * DK: col0 + (h + 1) * DK] for h in range(H)],
            axis=0)

    q_hb = gather_heads(0 * D)        # already scaled by 1/sqrt(DK)
    k_hb = gather_heads(1 * D)
    v_hb = gather_heads(2 * D)

    # Exactly two batched einsums over the combined (head, batch) axis.
    s = jnp.einsum("gqd,gkd->gqk", q_hb, k_hb,
                   preferred_element_type=jnp.float32)              # (H*B, S, S)
    m = jnp.max(s, axis=-1, keepdims=True)
    e = jnp.exp(s - m)
    inv_l = pl.reciprocal(jnp.sum(e, axis=-1, keepdims=True), approx=True)
    ctx = jnp.einsum("gqk,gkd->gqd", e * inv_l, v_hb,
                     preferred_element_type=jnp.float32)            # (H*B, S, DK)

    # Output projection: fold heads back through a head-blocked Wo
    # (no lane-axis concatenate of head outputs).
    ctx_h = ctx.reshape(H, B * S, DK)                               # (H, B*S, DK)
    wo_h = w_ref[:, _WO0:_W10].reshape(H, DK, D)                    # (H, DK, D)
    attn = jnp.einsum("hmd,hde->hme", ctx_h, wo_h,
                      preferred_element_type=jnp.float32).sum(axis=0) + bo
    # TODO(synk): dropout is identity in eval mode; no stochastic masking applied.
    x1 = x + attn

    # ---------- sublayer 1: pre-LN position-wise feed-forward + residual ----------
    ln2 = _layernorm(x1, ln2a, ln2b)
    hid = jnp.maximum(
        jnp.dot(ln2, w_ref[:, _W10:_WEND],
                preferred_element_type=jnp.float32) + b1, 0.0)      # (B*S, DFF)
    ff = jnp.dot(hid, w2_ref[...], preferred_element_type=jnp.float32) + b2

    o_ref[...] = x1 + ff


def pack_params(params):
    """Host-side packing.  Fuses Q|K|V (folding the 1/sqrt(DK) attention scale
    into wq AND bq), packs [wqkv | wo | w1] into one (D, 4D+DFF) slab and all
    eight small vectors into one (8, 128) slab.  NOTE: the fused slabs are not
    interchangeable with the raw per-tensor params (wq/bq carry the scale)."""
    scale = 1.0 / math.sqrt(DK)
    wqkv = jnp.concatenate(
        [params["wq"] * scale, params["wk"], params["wv"]], axis=1)   # (D, 3D)
    bqkv = jnp.concatenate(
        [params["bq"] * scale, params["bk"], params["bv"]], axis=1)   # (1, 3D)
    w_slab = jnp.concatenate(
        [wqkv, params["wo"], params["w1"]], axis=1)                   # (D, 192)

    def row(v):
        v = v.reshape(-1)
        return jnp.pad(v, (0, 128 - v.shape[0]))

    vec_slab = jnp.stack([
        row(params["ln1a"]), row(params["ln1b"]), row(params["bo"]),
        row(params["ln2a"]), row(params["ln2b"]), row(params["b2"]),
        row(params["b1"]), row(bqkv),
    ], axis=0)                                                        # (8, 128)
    return vec_slab, w_slab, params["w2"]


@jax.jit
def encoder_layer(x, vec_slab, w_slab, w2):
    x_flat = x.reshape(B * S, D)
    # Grid-free: the whole (B,S,D)=(2,8,32) problem is one pipeline step (per-step
    # overhead would otherwise dominate); all operands live in VMEM.  The output
    # is aliased onto the flattened input (x is only read through the residuals).
    out_flat = pl.pallas_call(
        encoder_layer_kernel,
        out_shape=jax.ShapeDtypeStruct((B * S, D), x.dtype),
        input_output_aliases={0: 0},
    )(x_flat, vec_slab, w_slab, w2)
    return out_flat.reshape(B, S, D)


def init_params(key):
    ks = jax.random.split(key, 12)

    def w(k, shape, scale=0.02):
        return (scale * jax.random.normal(k, shape)).astype(jnp.float32)

    return {
        "ln1a": jnp.ones((1, D), jnp.float32),
        "ln1b": jnp.zeros((1, D), jnp.float32),
        "wq": w(ks[0], (D, D)),   "bq": w(ks[1], (1, D)),
        "wk": w(ks[2], (D, D)),   "bk": w(ks[3], (1, D)),
        "wv": w(ks[4], (D, D)),   "bv": w(ks[5], (1, D)),
        "wo": w(ks[6], (D, D)),   "bo": w(ks[7], (1, D)),
        "ln2a": jnp.ones((1, D), jnp.float32),
        "ln2b": jnp.zeros((1, D), jnp.float32),
        "w1": w(ks[8], (D, DFF)), "b1": w(ks[9], (1, DFF)),
        "w2": w(ks[10], (DFF, D)), "b2": w(ks[11], (1, D)),
    }


def reference(x, p):
    """Plain-JAX reference for correctness checking (uses the raw params)."""
    def ln(y, a, b):
        mean = y.mean(-1, keepdims=True)
        d = y - mean
        std = jnp.sqrt((d * d).sum(-1, keepdims=True) / (y.shape[-1] - 1))
        return a * d / (std + EPS) + b

    ln1 = ln(x, p["ln1a"], p["ln1b"])
    q = ln1 @ p["wq"] + p["bq"]
    k = ln1 @ p["wk"] + p["bk"]
    v = ln1 @ p["wv"] + p["bv"]
    qh = q.reshape(B, S, H, DK).transpose(0, 2, 1, 3)
    kh = k.reshape(B, S, H, DK).transpose(0, 2, 1, 3)
    vh = v.reshape(B, S, H, DK).transpose(0, 2, 1, 3)
    s = jnp.einsum("bhqd,bhkd->bhqk", qh, kh) / math.sqrt(DK)
    pr = jax.nn.softmax(s, axis=-1)
    ctx = jnp.einsum("bhqk,bhkd->bhqd", pr, vh).transpose(0, 2, 1, 3).reshape(B, S, D)
    x1 = x + (ctx @ p["wo"] + p["bo"])
    ln2 = ln(x1, p["ln2a"], p["ln2b"])
    ff = jnp.maximum(ln2 @ p["w1"] + p["b1"], 0.0) @ p["w2"] + p["b2"]
    return x1 + ff


if __name__ == "__main__":
    key = jax.random.PRNGKey(0)
    kx, kp = jax.random.split(key)
    x = jax.random.normal(kx, (B, S, D), dtype=jnp.float32)
    params = init_params(kp)
    vec_slab, w_slab, w2 = pack_params(params)

    out = jax.block_until_ready(encoder_layer(x, vec_slab, w_slab, w2))
    ref = jax.block_until_ready(reference(x, params))

    assert out.shape == (B, S, D) and out.dtype == jnp.float32
    assert jnp.allclose(out, ref, atol=1e-3, rtol=1e-3), (
        float(jnp.max(jnp.abs(out - ref))))
    print("KERNEL_OK")
</pallas_src>

<mosaic_0001>
module attributes {stable_mosaic.version = 11 : i64} {
  func.func @encoder_layer_kernel(%arg0: memref<16x32xf32, #tpu.memory_space<vmem>>, %arg1: memref<8x128xf32, #tpu.memory_space<vmem>>, %arg2: memref<32x192xf32, #tpu.memory_space<vmem>>, %arg3: memref<64x32xf32, #tpu.memory_space<vmem>>, %arg4: memref<16x32xf32, #tpu.memory_space<vmem>>) attributes {dimension_semantics = [], scalar_prefetch = 0 : i64, scratch_operands = 0 : i64, tpu.core_type = #tpu.core_type<tc>} {
    %c0 = arith.constant 0 : index
    %c0_0 = arith.constant 0 : index
    %0 = vector.load %arg0[%c0, %c0_0] : memref<16x32xf32, #tpu.memory_space<vmem>>, vector<16x32xf32>
    %c0_1 = arith.constant 0 : index
    %c0_2 = arith.constant 0 : index
    %1 = vector.load %arg1[%c0_1, %c0_2] : memref<8x128xf32, #tpu.memory_space<vmem>>, vector<1x32xf32>
    %c1 = arith.constant 1 : index
    %c0_3 = arith.constant 0 : index
    %2 = vector.load %arg1[%c1, %c0_3] : memref<8x128xf32, #tpu.memory_space<vmem>>, vector<1x32xf32>
    %c2 = arith.constant 2 : index
    %c0_4 = arith.constant 0 : index
    %3 = vector.load %arg1[%c2, %c0_4] : memref<8x128xf32, #tpu.memory_space<vmem>>, vector<1x32xf32>
    %c3 = arith.constant 3 : index
    %c0_5 = arith.constant 0 : index
    %4 = vector.load %arg1[%c3, %c0_5] : memref<8x128xf32, #tpu.memory_space<vmem>>, vector<1x32xf32>
    %c4 = arith.constant 4 : index
    %c0_6 = arith.constant 0 : index
    %5 = vector.load %arg1[%c4, %c0_6] : memref<8x128xf32, #tpu.memory_space<vmem>>, vector<1x32xf32>
    %c5 = arith.constant 5 : index
    %c0_7 = arith.constant 0 : index
    %6 = vector.load %arg1[%c5, %c0_7] : memref<8x128xf32, #tpu.memory_space<vmem>>, vector<1x32xf32>
    %c6 = arith.constant 6 : index
    %c0_8 = arith.constant 0 : index
    %7 = vector.load %arg1[%c6, %c0_8] : memref<8x128xf32, #tpu.memory_space<vmem>>, vector<1x64xf32>
    %c7 = arith.constant 7 : index
    %c0_9 = arith.constant 0 : index
    %8 = vector.load %arg1[%c7, %c0_9] : memref<8x128xf32, #tpu.memory_space<vmem>>, vector<1x96xf32>
    %cst = arith.constant dense<0.000000e+00> : vector<16xf32>
    %9 = vector.multi_reduction <add>, %0, %cst [1] : vector<16x32xf32> to vector<16xf32>
    %10 = vector.shape_cast %9 : vector<16xf32> to vector<16x1xf32>
    %cst_10 = arith.constant 3.200000e+01 : f32
    %11 = vector.broadcast %cst_10 : f32 to vector<16x1xf32>
    %12 = arith.divf %10, %11 : vector<16x1xf32>
    %13 = vector.broadcast %12 : vector<16x1xf32> to vector<16x32xf32>
    %14 = arith.subf %0, %13 : vector<16x32xf32>
    %15 = arith.mulf %14, %14 : vector<16x32xf32>
    %cst_11 = arith.constant dense<0.000000e+00> : vector<16xf32>
    %16 = vector.multi_reduction <add>, %15, %cst_11 [1] : vector<16x32xf32> to vector<16xf32>
    %17 = vector.shape_cast %16 : vector<16xf32> to vector<16x1xf32>
    %cst_12 = arith.constant 0.0322580636 : f32
    %18 = vector.broadcast %cst_12 : f32 to vector<16x1xf32>
    %19 = arith.mulf %17, %18 : vector<16x1xf32>
    %20 = vector.broadcast %1 : vector<1x32xf32> to vector<16x32xf32>
    %21 = arith.mulf %20, %14 : vector<16x32xf32>
    %22 = math.sqrt %19 : vector<16x1xf32>
    %cst_13 = arith.constant 9.99999997E-7 : f32
    %23 = vector.broadcast %cst_13 : f32 to vector<16x1xf32>
    %24 = arith.addf %22, %23 : vector<16x1xf32>
    %25 = vector.broadcast %24 : vector<16x1xf32> to vector<16x32xf32>
    %26 = arith.divf %21, %25 : vector<16x32xf32>
    %27 = vector.broadcast %2 : vector<1x32xf32> to vector<16x32xf32>
    %28 = arith.addf %26, %27 : vector<16x32xf32>
    %c0_14 = arith.constant 0 : index
    %c0_15 = arith.constant 0 : index
    %29 = vector.load %arg2[%c0_14, %c0_15] : memref<32x192xf32, #tpu.memory_space<vmem>>, vector<32x96xf32>
    %cst_16 = arith.constant dense<0.000000e+00> : vector<16x96xf32>
    %30 = tpu.matmul %28, %29, %cst_16 {dimension_numbers = #tpu.dot_dimension_numbers<[1], [0], [0], [1], [0, 0, 1, 1], [], []>} : vector<16x32xf32>, vector<32x96xf32>, vector<16x96xf32> -> vector<16x96xf32>
    %31 = vector.broadcast %8 : vector<1x96xf32> to vector<16x96xf32>
    %32 = arith.addf %30, %31 : vector<16x96xf32>
    %33 = vector.shape_cast %32 : vector<16x96xf32> to vector<2x8x96xf32>
    %34 = vector.extract_strided_slice %33 {offsets = [0, 0, 0], sizes = [2, 8, 8], strides = [1, 1, 1]} : vector<2x8x96xf32> to vector<2x8x8xf32>
    %35 = vector.extract_strided_slice %33 {offsets = [0, 0, 8], sizes = [2, 8, 8], strides = [1, 1, 1]} : vector<2x8x96xf32> to vector<2x8x8xf32>
    %36 = vector.extract_strided_slice %33 {offsets = [0, 0, 16], sizes = [2, 8, 8], strides = [1, 1, 1]} : vector<2x8x96xf32> to vector<2x8x8xf32>
    %37 = vector.extract_strided_slice %33 {offsets = [0, 0, 24], sizes = [2, 8, 8], strides = [1, 1, 1]} : vector<2x8x96xf32> to vector<2x8x8xf32>
    %38 = tpu.concatenate %34, %35, %36, %37 in 0 : vector<2x8x8xf32>, vector<2x8x8xf32>, vector<2x8x8xf32>, vector<2x8x8xf32> -> vector<8x8x8xf32>
    %39 = vector.extract_strided_slice %33 {offsets = [0, 0, 32], sizes = [2, 8, 8], strides = [1, 1, 1]} : vector<2x8x96xf32> to vector<2x8x8xf32>
    %40 = vector.extract_strided_slice %33 {offsets = [0, 0, 40], sizes = [2, 8, 8], strides = [1, 1, 1]} : vector<2x8x96xf32> to vector<2x8x8xf32>
    %41 = vector.extract_strided_slice %33 {offsets = [0, 0, 48], sizes = [2, 8, 8], strides = [1, 1, 1]} : vector<2x8x96xf32> to vector<2x8x8xf32>
    %42 = vector.extract_strided_slice %33 {offsets = [0, 0, 56], sizes = [2, 8, 8], strides = [1, 1, 1]} : vector<2x8x96xf32> to vector<2x8x8xf32>
    %43 = tpu.concatenate %39, %40, %41, %42 in 0 : vector<2x8x8xf32>, vector<2x8x8xf32>, vector<2x8x8xf32>, vector<2x8x8xf32> -> vector<8x8x8xf32>
    %44 = vector.extract_strided_slice %33 {offsets = [0, 0, 64], sizes = [2, 8, 8], strides = [1, 1, 1]} : vector<2x8x96xf32> to vector<2x8x8xf32>
    %45 = vector.extract_strided_slice %33 {offsets = [0, 0, 72], sizes = [2, 8, 8], strides = [1, 1, 1]} : vector<2x8x96xf32> to vector<2x8x8xf32>
    %46 = vector.extract_strided_slice %33 {offsets = [0, 0, 80], sizes = [2, 8, 8], strides = [1, 1, 1]} : vector<2x8x96xf32> to vector<2x8x8xf32>
    %47 = vector.extract_strided_slice %33 {offsets = [0, 0, 88], sizes = [2, 8, 8], strides = [1, 1, 1]} : vector<2x8x96xf32> to vector<2x8x8xf32>
    %48 = tpu.concatenate %44, %45, %46, %47 in 0 : vector<2x8x8xf32>, vector<2x8x8xf32>, vector<2x8x8xf32>, vector<2x8x8xf32> -> vector<8x8x8xf32>
    "tpu.trace_start"() <{level = 10 : i32, message = "gqd,gkd->gqk"}> : () -> ()
    %cst_17 = arith.constant dense<0.000000e+00> : vector<8x8x8xf32>
    %49 = tpu.matmul %38, %43, %cst_17 {dimension_numbers = #tpu.dot_dimension_numbers<[2], [2], [1], [1], [0, 0, 0, 1, 1, 1], [0], [0]>} : vector<8x8x8xf32>, vector<8x8x8xf32>, vector<8x8x8xf32> -> vector<8x8x8xf32>
    "tpu.trace_stop"() : () -> ()
    %cst_18 = arith.constant dense<0xFF800000> : vector<8x8xf32>
    %50 = vector.multi_reduction <maximumf>, %49, %cst_18 [2] : vector<8x8x8xf32> to vector<8x8xf32>
    %51 = vector.shape_cast %50 : vector<8x8xf32> to vector<8x8x1xf32>
    %52 = vector.broadcast %51 : vector<8x8x1xf32> to vector<8x8x8xf32>
    %53 = arith.subf %49, %52 : vector<8x8x8xf32>
    %54 = math.exp %53 : vector<8x8x8xf32>
    %cst_19 = arith.constant dense<0.000000e+00> : vector<8x8xf32>
    %55 = vector.multi_reduction <add>, %54, %cst_19 [2] : vector<8x8x8xf32> to vector<8x8xf32>
    %56 = vector.shape_cast %55 : vector<8x8xf32> to vector<8x8x1xf32>
    %57 = tpu.reciprocal %56 {approx = true} : vector<8x8x1xf32> -> vector<8x8x1xf32>
    %58 = vector.broadcast %57 : vector<8x8x1xf32> to vector<8x8x8xf32>
    %59 = arith.mulf %54, %58 : vector<8x8x8xf32>
    "tpu.trace_start"() <{level = 10 : i32, message = "gqk,gkd->gqd"}> : () -> ()
    %cst_20 = arith.constant dense<0.000000e+00> : vector<8x8x8xf32>
    %60 = tpu.matmul %59, %48, %cst_20 {dimension_numbers = #tpu.dot_dimension_numbers<[2], [1], [1], [2], [0, 0, 0, 1, 1, 2], [0], [0]>} : vector<8x8x8xf32>, vector<8x8x8xf32>, vector<8x8x8xf32> -> vector<8x8x8xf32>
    "tpu.trace_stop"() : () -> ()
    %61 = vector.shape_cast %60 : vector<8x8x8xf32> to vector<4x16x8xf32>
    %c0_21 = arith.constant 0 : index
    %c96 = arith.constant 96 : index
    %62 = vector.load %arg2[%c0_21, %c96] : memref<32x192xf32, #tpu.memory_space<vmem>>, vector<32x32xf32>
    %63 = vector.shape_cast %62 : vector<32x32xf32> to vector<4x8x32xf32>
    "tpu.trace_start"() <{level = 10 : i32, message = "hmd,hde->hme"}> : () -> ()
    %cst_22 = arith.constant dense<0.000000e+00> : vector<4x16x32xf32>
    %64 = tpu.matmul %61, %63, %cst_22 {dimension_numbers = #tpu.dot_dimension_numbers<[2], [1], [1], [2], [0, 0, 0, 1, 1, 2], [0], [0]>} : vector<4x16x8xf32>, vector<4x8x32xf32>, vector<4x16x32xf32> -> vector<4x16x32xf32>
    "tpu.trace_stop"() : () -> ()
    %cst_23 = arith.constant dense<0.000000e+00> : vector<16x32xf32>
    %65 = vector.multi_reduction <add>, %64, %cst_23 [0] : vector<4x16x32xf32> to vector<16x32xf32>
    %66 = vector.broadcast %3 : vector<1x32xf32> to vector<16x32xf32>
    %67 = arith.addf %65, %66 : vector<16x32xf32>
    %68 = arith.addf %0, %67 : vector<16x32xf32>
    %cst_24 = arith.constant dense<0.000000e+00> : vector<16xf32>
    %69 = vector.multi_reduction <add>, %68, %cst_24 [1] : vector<16x32xf32> to vector<16xf32>
    %70 = vector.shape_cast %69 : vector<16xf32> to vector<16x1xf32>
    %cst_25 = arith.constant 3.200000e+01 : f32
    %71 = vector.broadcast %cst_25 : f32 to vector<16x1xf32>
    %72 = arith.divf %70, %71 : vector<16x1xf32>
    %73 = vector.broadcast %72 : vector<16x1xf32> to vector<16x32xf32>
    %74 = arith.subf %68, %73 : vector<16x32xf32>
    %75 = arith.mulf %74, %74 : vector<16x32xf32>
    %cst_26 = arith.constant dense<0.000000e+00> : vector<16xf32>
    %76 = vector.multi_reduction <add>, %75, %cst_26 [1] : vector<16x32xf32> to vector<16xf32>
    %77 = vector.shape_cast %76 : vector<16xf32> to vector<16x1xf32>
    %cst_27 = arith.constant 0.0322580636 : f32
    %78 = vector.broadcast %cst_27 : f32 to vector<16x1xf32>
    %79 = arith.mulf %77, %78 : vector<16x1xf32>
    %80 = vector.broadcast %4 : vector<1x32xf32> to vector<16x32xf32>
    %81 = arith.mulf %80, %74 : vector<16x32xf32>
    %82 = math.sqrt %79 : vector<16x1xf32>
    %cst_28 = arith.constant 9.99999997E-7 : f32
    %83 = vector.broadcast %cst_28 : f32 to vector<16x1xf32>
    %84 = arith.addf %82, %83 : vector<16x1xf32>
    %85 = vector.broadcast %84 : vector<16x1xf32> to vector<16x32xf32>
    %86 = arith.divf %81, %85 : vector<16x32xf32>
    %87 = vector.broadcast %5 : vector<1x32xf32> to vector<16x32xf32>
    %88 = arith.addf %86, %87 : vector<16x32xf32>
    %c0_29 = arith.constant 0 : index
    %c128 = arith.constant 128 : index
    %89 = vector.load %arg2[%c0_29, %c128] : memref<32x192xf32, #tpu.memory_space<vmem>>, vector<32x64xf32>
    %cst_30 = arith.constant dense<0.000000e+00> : vector<16x64xf32>
    %90 = tpu.matmul %88, %89, %cst_30 {dimension_numbers = #tpu.dot_dimension_numbers<[1], [0], [0], [1], [0, 0, 1, 1], [], []>} : vector<16x32xf32>, vector<32x64xf32>, vector<16x64xf32> -> vector<16x64xf32>
    %91 = vector.broadcast %7 : vector<1x64xf32> to vector<16x64xf32>
    %92 = arith.addf %90, %91 : vector<16x64xf32>
    %cst_31 = arith.constant 0.000000e+00 : f32
    %93 = vector.broadcast %cst_31 : f32 to vector<16x64xf32>
    %94 = arith.maximumf %92, %93 : vector<16x64xf32>
    %c0_32 = arith.constant 0 : index
    %c0_33 = arith.constant 0 : index
    %95 = vector.load %arg3[%c0_32, %c0_33] : memref<64x32xf32, #tpu.memory_space<vmem>>, vector<64x32xf32>
    %cst_34 = arith.constant dense<0.000000e+00> : vector<16x32xf32>
    %96 = tpu.matmul %94, %95, %cst_34 {dimension_numbers = #tpu.dot_dimension_numbers<[1], [0], [0], [1], [0, 0, 1, 1], [], []>} : vector<16x64xf32>, vector<64x32xf32>, vector<16x32xf32> -> vector<16x32xf32>
    %97 = vector.broadcast %6 : vector<1x32xf32> to vector<16x32xf32>
    %98 = arith.addf %96, %97 : vector<16x32xf32>
    %99 = arith.addf %68, %98 : vector<16x32xf32>
    %c0_35 = arith.constant 0 : index
    %c0_36 = arith.constant 0 : index
    %100 = vector.load %arg4[%c0_35, %c0_36] : memref<16x32xf32, #tpu.memory_space<vmem>>, vector<16x32xf32>
    tpu.vector_store %arg4[%c0_35, %c0_36], %99 {strides = array<i32>} : memref<16x32xf32, #tpu.memory_space<vmem>>, vector<16x32xf32>,
    return
  }
}

</mosaic_0001>

<bundles_post_ra>
// kernel: encoder_layer.1
= control target key start
LH: loop header
LB: loop body
LE: loop exit
PB: predicated region body
PF: predicated region fallthrough
CT: control target
= control target key end

     0   :  { %vm27_vm0 = vcmask 261120   ;;  %v2409_v45 = vmov 0.0   ;;  %vm2410_vm5 = vmmov 0   ;;  %s2411_s6 = smov 120   ;;  %s2412_s7 = smov 112   ;;  %vm186_vm6 = vcmask 64512   ;;  %s2762_s0 = inlined_call_operand.vmem [shape: f32[16,32], index: 0, kind: input, shape index: {}, may-alias: {0,4}]   ;;  %s2763_s2 = inlined_call_operand.vmem [shape: f32[32,192], index: 2, kind: input, shape index: {}]   ;;  %s2764_s1 = inlined_call_operand.vmem [shape: f32[8,128], index: 1, kind: input, shape index: {}]   ;;  %s2765_s3 = inlined_call_operand.vmem [shape: f32[64,32], index: 3, kind: input, shape index: {}]   ;;  %s2766_s4 = inlined_call_operand.vmem [shape: f32[16,32], index: 4, kind: output, shape index: {}, may-alias: {0,4}]  }
   0x1   :  { %v2445_v0 = vld [vmem:[%s2762_s0] sm:$0xff]  ;;  %v2450_v1 = vld [vmem:[%s2762_s0 + $0x8] sm:$0xff]  ;;  %v2463_v14 = vld [vmem:[%s2763_s2 + $0x30] sm:$0xff]  ;;  %2228 = vmatprep.subr.mxu1 %v2409_v45  ;;  %2230 = vmatprep.mubr.msk.f32.mxu1 %vm2410_vm5, %v2409_v45  ;;  %s2413_s8 = smov 104   ;;  %s2414_s9 = smov 96   ;;  %vm2010_vm11 = vcmask 523264  }
   0x2   :  { %v28_v2 = vsel %vm27_vm0, %v2445_v0, 0.0  ;;  %v31_v3 = vsel %vm27_vm0, %v2450_v1, 0.0  ;;  %v2468_v15 = vld [vmem:[%s2763_s2 + $0x20] sm:$0xff]  ;;  %2212 = vmatprep.subr.mxu0 %v2463_v14  ;;  %v2475_v16 = vld [vmem:[%s2763_s2 + $0x10] sm:$0xff]  ;;  %s2415_s10 = smov 64   ;;  %s2416_s11 = smov 32  }
   0x3   :  { %29 = vadd.xlane.f32.xlu0 %v28_v2  ;;  %2213 = vmatpush3.msra.mxu0 %v2463_v14  ;;  %v2484_v17 = vld [vmem:[%s2763_s2] sm:$0xff] }
   0x4   :  { %2214 = vmatprep.subr.mxu0 %v2468_v15  ;;  %v2100_v34 = vld [vmem:[%s2764_s1] ss:$0 sm:$0xff]  ;;  %v2101_v37 = vld [vmem:[%s2764_s1 + $0x1] ss:$0 sm:$0xff]  ;;  %v2102_v44 = vld [vmem:[%s2764_s1 + $0x7] ss:$0 sm:$0xff] }
   0x5   :  { %2215 = vmatpush3.msra.mxu0 %v2468_v15 }
   0x6   :  { %2216 = vmatprep.subr.mxu0 %v2475_v16 }
   0x7   :  { %32 = vadd.xlane.f32.xlu0 %v31_v3  ;;  %2217 = vmatpush3.msra.mxu0 %v2475_v16 }
   0x8   :  { %2218 = vmatprep.subr.mxu0 %v2484_v17 }
   0x9   :  { %2219 = vmatpush3.msra.mxu0 %v2484_v17 }
   0xa   :  { %2223 = vmatprep.subr.mxu0 %v2409_v45 }
  0x8c   :  { %v30_v4 = vpop.xlane.xlu0 %29 }
  0x8d   :  { %v35_v5 = vmul.f32 0.03125, %v30_v4 }
  0x8f   :  { %v37_v6 = vsub.f32 %v2445_v0, %v35_v5 }
  0x90   :  { %v33_v7 = vpop.xlane.xlu0 %32 }
  0x91   :  { %v36_v8 = vmul.f32 0.03125, %v33_v7  ;;  %v39_v9 = vmul.f32 %v37_v6, %v37_v6  ;;  %v53_v35 = vmul.f32 %v2100_v34, %v37_v6 }
  0x93   :  { %v38_v10 = vsub.f32 %v2450_v1, %v36_v8  ;;  %v41_v11 = vsel %vm27_vm0, %v39_v9, 0.0 }
  0x94   :  { %42 = vadd.xlane.f32.xlu1 %v41_v11 }
  0x95   :  { %v40_v12 = vmul.f32 %v38_v10, %v38_v10  ;;  %v54_v39 = vmul.f32 %v2100_v34, %v38_v10 }
  0x97   :  { %v44_v13 = vsel %vm27_vm0, %v40_v12, 0.0 }
  0x98   :  { %45 = vadd.xlane.f32.xlu1 %v44_v13 }
 0x11d   :  { %v43_v18 = vpop.xlane.xlu1 %42 }
 0x11e   :  { %v47_v19 = vmul.f32 0.032258064, %v43_v18 }
 0x120   :  { %2361 = vrsqrt.f32 %v47_v19  ;;  %vm57_vm1 = vcmp.eq.f32.partialorder %v47_v19, inf  ;;  %v60_v24 = vand.u32 2147483648, %v47_v19  ;;  %vm59_vm2 = vcmp.eq.f32.partialorder %v47_v19, 0.0 }
 0x121   :  { %v46_v20 = vpop.xlane.xlu1 %45 }
 0x122   :  { %v48_v21 = vmul.f32 0.032258064, %v46_v20 }
 0x124   :  { %2363 = vrsqrt.f32 %v48_v21  ;;  %vm64_vm3 = vcmp.eq.f32.partialorder %v48_v21, inf  ;;  %v67_v30 = vand.u32 2147483648, %v48_v21  ;;  %vm66_vm4 = vcmp.eq.f32.partialorder %v48_v21, 0.0 }
 0x12d   :  { %v2362_v22 = vpop.eup %2361 }
 0x12e   :  { %v56_v23 = vmul.f32 %v2362_v22, %v47_v19 }
 0x130   :  { %v58_v25 = vsel %vm57_vm1, %v47_v19, %v56_v23 }
 0x131   :  { %v2364_v26 = vpop.eup %2363  ;;  %v61_v27 = vsel %vm59_vm2, %v60_v24, %v58_v25 }
 0x132   :  { %v63_v28 = vmul.f32 %v2364_v26, %v48_v21  ;;  %v69_v29 = vadd.f32 1e-06, %v61_v27 }
 0x134   :  { %v65_v31 = vsel %vm64_vm3, %v48_v21, %v63_v28  ;;  %2365 = vrcp.f32 %v69_v29 }
 0x135   :  { %v68_v32 = vsel %vm66_vm4, %v67_v30, %v65_v31 }
 0x136   :  { %v70_v33 = vadd.f32 1e-06, %v68_v32 }
 0x138   :  { %2367 = vrcp.f32 %v70_v33 }
 0x141   :  { %v2366_v36 = vpop.eup %2365 }
 0x142   :  { %v72_v38 = vmul.f32 %v2366_v36, %v53_v35 }
 0x144   :  { %v79_v40 = vadd.f32 %v2101_v37, %v72_v38 }
 0x145   :  { %v2368_v41 = vpop.eup %2367 }
 0x146   :  { %v74_v42 = vmul.f32 %v2368_v41, %v54_v39  ;;  %2220 = vmatprep.mubr.msk.f32.mxu0 %vm27_vm0, %v79_v40 }
 0x148   :  { %v80_v43 = vadd.f32 %v2101_v37, %v74_v42 }
 0x14a   :  { %2221 = vmatmul.mubr.msk.f32.vlgmr.msra.gmra.mxu0 %vm27_vm0, %v80_v43 }
 0x14b   :  { %2225 = vmatprep.mubr.msk.f32.mxu0 %vm2410_vm5, %v2409_v45 }
 0x20a   :  { %v2222_v46 = vpop.f32.mrf.mxu0 }
 0x20b   :  { %v2501_v47 = vadd.f32 %v2222_v46, %v2102_v44 }
 0x20c   :  { %v161_v48 = vpop.f32.mrf.mxu0 }
 0x20d   :  { %v2507_v49 = vadd.f32 %v2102_v44, %v161_v48  ;;  %174 = vrot.lane.b32.xlu1 %v2501_v47, %s2411_s6 }
 0x20f   :  { %172 = vrot.lane.b32.xlu0 %v2507_v49, %s2411_s6 }
 0x211   :  { %176 = vrot.lane.b32.xlu1 %v2507_v49, %s2412_s7 }
 0x213   :  { %180 = vrot.lane.b32.xlu0 %v2507_v49, %s2413_s8 }
 0x215   :  { %178 = vrot.lane.b32.xlu1 %v2501_v47, %s2412_s7 }
 0x217   :  { %184 = vrot.lane.b32.xlu0 %v2507_v49, %s2414_s9 }
 0x219   :  { %182 = vrot.lane.b32.xlu1 %v2501_v47, %s2413_s8 }
 0x21d   :  { %261 = vrot.lane.b32.xlu1 %v2501_v47, %s2414_s9 }
 0x27f   :  { %v2517_v50 = vpop.permute.xlu1 %174 }
 0x280   :  { %413 = vrot.lane.b32.xlu1 %v2517_v50, %s2414_s9 }
 0x281   :  { %v2520_v51 = vpop.permute.xlu0 %172 }
 0x282   :  { %337 = vrot.lane.b32.xlu0 %v2520_v51, %s2414_s9 }
 0x283   :  { %v2523_v52 = vpop.permute.xlu1 %176 }
 0x285   :  { %v2525_v53 = vpop.permute.xlu0 %180 }
 0x286   :  { %489 = vrot.lane.b32.xlu0 %v2523_v52, %s2414_s9 }
 0x287   :  { %v2528_v54 = vpop.permute.xlu1 %178 }
 0x288   :  { %565 = vrot.lane.b32.xlu1 %v2528_v54, %s2414_s9 }
 0x289   :  { %v185_v55 = vpop.permute.xlu0 %184 }
 0x28a   :  { %641 = vrot.lane.b32.xlu0 %v2525_v53, %s2414_s9  ;;  %2224 = vmatpush3.xpose.msk.msra.mxu0 %vm186_vm6, %v185_v55 }
 0x28b   :  { %v2533_v56 = vpop.permute.xlu1 %182  ;;  %2233 = vmatprep.subr.mxu0 %v2409_v45 }
 0x28c   :  { %717 = vrot.lane.b32.xlu1 %v2533_v56, %s2414_s9 }
 0x28d   :  { %2226 = vmatmul.mubr.msk.f32.vlgmr.msra.gmra.mxu0 %vm186_vm6, %v2507_v49 }
 0x28e   :  { %2235 = vmatprep.mubr.msk.f32.mxu0 %vm2410_vm5, %v2409_v45 }
 0x28f   :  { %v262_v57 = vpop.permute.xlu1 %261 }
 0x290   :  { %2229 = vmatpush3.xpose.msk.msra.mxu1 %vm186_vm6, %v262_v57 }
 0x291   :  { %2238 = vmatprep.subr.mxu1 %v2409_v45 }
 0x293   :  { %2231 = vmatmul.mubr.msk.f32.vlgmr.msra.gmra.mxu1 %vm186_vm6, %v2501_v47 }
 0x294   :  { %2240 = vmatprep.mubr.msk.f32.mxu1 %vm2410_vm5, %v2409_v45 }
 0x2f2   :  { %v414_v58 = vpop.permute.xlu1 %413 }
 0x2f3   :  { %2239 = vmatpush3.xpose.msk.msra.mxu1 %vm186_vm6, %v414_v58 }
 0x2f4   :  { %v338_v59 = vpop.permute.xlu0 %337  ;;  %2248 = vmatprep.subr.mxu1 %v2409_v45 }
 0x2f5   :  { %2234 = vmatpush3.xpose.msk.msra.mxu0 %vm186_vm6, %v338_v59 }
 0x2f6   :  { %2241 = vmatmul.mubr.msk.f32.vlgmr.msra.gmra.mxu1 %vm186_vm6, %v2517_v50  ;;  %2243 = vmatprep.subr.mxu0 %v2409_v45 }
 0x2f7   :  { %2250 = vmatprep.mubr.msk.f32.mxu1 %vm2410_vm5, %v2409_v45 }
 0x2f8   :  { %2236 = vmatmul.mubr.msk.f32.vlgmr.msra.gmra.mxu0 %vm186_vm6, %v2520_v51  ;;  %v490_v60 = vpop.permute.xlu0 %489 }
 0x2f9   :  { %2244 = vmatpush3.xpose.msk.msra.mxu0 %vm186_vm6, %v490_v60  ;;  %2245 = vmatprep.mubr.msk.f32.mxu0 %vm2410_vm5, %v2409_v45 }
 0x2fa   :  { %v566_v61 = vpop.permute.xlu1 %565  ;;  %2253 = vmatprep.subr.mxu0 %v2409_v45 }
 0x2fb   :  { %2249 = vmatpush3.xpose.msk.msra.mxu1 %vm186_vm6, %v566_v61 }
 0x2fc   :  { %2246 = vmatmul.mubr.msk.f32.vlgmr.msra.gmra.mxu0 %vm186_vm6, %v2523_v52  ;;  %v642_v62 = vpop.permute.xlu0 %641  ;;  %2258 = vmatprep.subr.mxu1 %v2409_v45 }
 0x2fd   :  { %2254 = vmatpush3.xpose.msk.msra.mxu0 %vm186_vm6, %v642_v62  ;;  %2255 = vmatprep.mubr.msk.f32.mxu0 %vm2410_vm5, %v2409_v45 }
 0x2fe   :  { %2251 = vmatmul.mubr.msk.f32.vlgmr.msra.gmra.mxu1 %vm186_vm6, %v2528_v54  ;;  %v718_v63 = vpop.permute.xlu1 %717  ;;  %2263 = vmatprep.subr.mxu0 %v2409_v45 }
 0x2ff   :  { %2259 = vmatpush3.xpose.msk.msra.mxu1 %vm186_vm6, %v718_v63  ;;  %2260 = vmatprep.mubr.msk.f32.mxu1 %vm2410_vm5, %v2409_v45 }
 0x300   :  { %2256 = vmatmul.mubr.msk.f32.vlgmr.msra.gmra.mxu0 %vm186_vm6, %v2525_v53  ;;  %2268 = vmatprep.subr.mxu1 %v2409_v45 }
 0x301   :  { %2265 = vmatprep.mubr.msk.f32.mxu0 %vm2410_vm5, %v2409_v45 }
 0x302   :  { %2261 = vmatmul.mubr.msk.f32.vlgmr.msra.gmra.mxu1 %vm186_vm6, %v2533_v56 }
 0x303   :  { %2270 = vmatprep.mubr.msk.f32.mxu1 %vm2410_vm5, %v2409_v45 }
 0x34d   :  { %v257_v2 = vpop.f32.mrf.mxu0 }
 0x34e   :  { %v793_v3 = vsel %vm186_vm6, %v257_v2, -inf }
 0x34f   :  { %794 = vmax.xlane.f32.xlu0 %v793_v3  ;;  %v2227_v4 = vpop.f32.mrf.mxu0 }
 0x353   :  { %v333_v5 = vpop.f32.mrf.mxu1 }
 0x354   :  { %v796_v6 = vsel %vm186_vm6, %v333_v5, -inf }
 0x355   :  { %797 = vmax.xlane.f32.xlu1 %v796_v6  ;;  %v2232_v7 = vpop.f32.mrf.mxu1 }
 0x3b6   :  { %v485_v8 = vpop.f32.mrf.mxu1 }
 0x3b7   :  { %v802_v9 = vsel %vm186_vm6, %v485_v8, -inf }
 0x3b8   :  { %v2242_v10 = vpop.f32.mrf.mxu1  ;;  %803 = vmax.xlane.f32.xlu0 %v802_v9  ;;  %v409_v11 = vpop.f32.mrf.mxu0 }
 0x3b9   :  { %v799_v13 = vsel %vm186_vm6, %v409_v11, -inf }
 0x3ba   :  { %v2237_v12 = vpop.f32.mrf.mxu0 }
 0x3bc   :  { %800 = vmax.xlane.f32.xlu0 %v799_v13  ;;  %v561_v18 = vpop.f32.mrf.mxu0 }
 0x3bd   :  { %v805_v22 = vsel %vm186_vm6, %v561_v18, -inf }
 0x3be   :  { %v2247_v19 = vpop.f32.mrf.mxu0  ;;  %v637_v20 = vpop.f32.mrf.mxu1 }
 0x3bf   :  { %v808_v21 = vsel %vm186_vm6, %v637_v20, -inf }
 0x3c0   :  { %809 = vmax.xlane.f32.xlu1 %v808_v21  ;;  %v2252_v23 = vpop.f32.mrf.mxu1  ;;  %806 = vmax.xlane.f32.xlu0 %v805_v22  ;;  %v713_v24 = vpop.f32.mrf.mxu0 }
 0x3c1   :  { %v811_v28 = vsel %vm186_vm6, %v713_v24, -inf }
 0x3c2   :  { %v2257_v25 = vpop.f32.mrf.mxu0  ;;  %v789_v26 = vpop.f32.mrf.mxu1 }
 0x3c3   :  { %v814_v27 = vsel %vm186_vm6, %v789_v26, -inf }
 0x3c4   :  { %815 = vmax.xlane.f32.xlu1 %v814_v27  ;;  %v2262_v29 = vpop.f32.mrf.mxu1  ;;  %812 = vmax.xlane.f32.xlu0 %v811_v28 }
 0x3d5   :  { %957 = vrot.lane.b32.xlu1 %v2501_v47, %s2415_s10 }
 0x3d8   :  { %v795_v30 = vpop.xlane.xlu0 %794 }
 0x3d9   :  { %1033 = vrot.lane.b32.xlu1 %v2520_v51, %s2415_s10  ;;  %v817_v31 = vsub.f32 %v257_v2, %v795_v30 }
 0x3da   :  { %881 = vrot.lane.b32.xlu0 %v2507_v49, %s2415_s10 }
 0x3db   :  { %v825_v32 = vmul.f32 1.442695, %v817_v31 }
 0x3dd   :  { %1109 = vrot.lane.b32.xlu1 %v2517_v50, %s2415_s10  ;;  %2369 = vpow2.f32 %v825_v32 }
 0x3de   :  { %1185 = vrot.lane.b32.xlu0 %v2523_v52, %s2415_s10  ;;  %v798_v33 = vpop.xlane.xlu1 %797 }
 0x3df   :  { %v818_v34 = vsub.f32 %v333_v5, %v798_v33 }
 0x3e1   :  { %1261 = vrot.lane.b32.xlu1 %v2528_v54, %s2415_s10  ;;  %v827_v35 = vmul.f32 1.442695, %v818_v34 }
 0x3e3   :  { %2371 = vpow2.f32 %v827_v35 }
 0x3ea   :  { %v2603_v36 = vpop.eup %2369 }
 0x3eb   :  { %v841_v37 = vsel %vm186_vm6, %v2603_v36, 0.0 }
 0x3f0   :  { %v2607_v38 = vpop.eup %2371 }
 0x3f1   :  { %v844_v39 = vsel %vm186_vm6, %v2607_v38, 0.0 }
 0x3fd   :  { %842 = vadd.xlane.f32.xlu0 %v841_v37 }
 0x405   :  { %845 = vadd.xlane.f32.xlu1 %v844_v39 }
 0x441   :  { %v804_v40 = vpop.xlane.xlu0 %803 }
 0x442   :  { %v820_v41 = vsub.f32 %v485_v8, %v804_v40 }
 0x444   :  { %v831_v42 = vmul.f32 1.442695, %v820_v41 }
 0x445   :  { %v801_v43 = vpop.xlane.xlu0 %800 }
 0x446   :  { %2373 = vpow2.f32 %v831_v42  ;;  %v819_v44 = vsub.f32 %v409_v11, %v801_v43 }
 0x448   :  { %v829_v46 = vmul.f32 1.442695, %v819_v44 }
 0x449   :  { %v810_v47 = vpop.xlane.xlu1 %809  ;;  %v807_v48 = vpop.xlane.xlu0 %806 }
 0x44a   :  { %2375 = vpow2.f32 %v829_v46  ;;  %v822_v49 = vsub.f32 %v637_v20, %v810_v47  ;;  %v821_v50 = vsub.f32 %v561_v18, %v807_v48 }
 0x44c   :  { %v835_v51 = vmul.f32 1.442695, %v822_v49  ;;  %v833_v52 = vmul.f32 1.442695, %v821_v50 }
 0x44d   :  { %v816_v54 = vpop.xlane.xlu1 %815  ;;  %v813_v55 = vpop.xlane.xlu0 %812 }
 0x44e   :  { %2377 = vpow2.f32 %v835_v51  ;;  %v824_v57 = vsub.f32 %v789_v26, %v816_v54  ;;  %v823_v58 = vsub.f32 %v713_v24, %v813_v55 }
 0x44f   :  { %2379 = vpow2.f32 %v833_v52 }
 0x450   :  { %v839_v59 = vmul.f32 1.442695, %v824_v57  ;;  %v837_v60 = vmul.f32 1.442695, %v823_v58 }
 0x451   :  { %v958_v61 = vpop.permute.xlu1 %957  ;;  %v882_v62 = vpop.permute.xlu0 %881 }
 0x452   :  { %2381 = vpow2.f32 %v839_v59  ;;  %2264 = vmatpush3.msra.mxu0 %v882_v62  ;;  %2269 = vmatpush3.msra.mxu1 %v958_v61 }
 0x453   :  { %v2374_v63 = vpop.eup %2373  ;;  %2383 = vpow2.f32 %v837_v60  ;;  %2273 = vmatprep.subr.mxu0 %v2409_v45  ;;  %2278 = vmatprep.subr.mxu1 %v2409_v45 }
 0x454   :  { %v850_v2 = vsel %vm186_vm6, %v2374_v63, 0.0 }
 0x455   :  { %851 = vadd.xlane.f32.xlu1 %v850_v2  ;;  %v1034_v13 = vpop.permute.xlu1 %1033  ;;  %v1186_v18 = vpop.permute.xlu0 %1185 }
 0x457   :  { %v2376_v3 = vpop.eup %2375 }
 0x458   :  { %v847_v4 = vsel %vm186_vm6, %v2376_v3, 0.0 }
 0x459   :  { %848 = vadd.xlane.f32.xlu0 %v847_v4  ;;  %v1110_v19 = vpop.permute.xlu1 %1109 }
 0x45b   :  { %v2615_v5 = vpop.eup %2377 }
 0x45c   :  { %v2617_v6 = vpop.eup %2379  ;;  %v856_v7 = vsel %vm186_vm6, %v2615_v5, 0.0 }
 0x45d   :  { %857 = vadd.xlane.f32.xlu1 %v856_v7  ;;  %v853_v8 = vsel %vm186_vm6, %v2617_v6, 0.0  ;;  %v1262_v21 = vpop.permute.xlu1 %1261 }
 0x45e   :  { %854 = vadd.xlane.f32.xlu0 %v853_v8 }
 0x45f   :  { %v2623_v9 = vpop.eup %2381 }
 0x460   :  { %v2625_v10 = vpop.eup %2383  ;;  %v862_v11 = vsel %vm186_vm6, %v2623_v9, 0.0 }
 0x461   :  { %863 = vadd.xlane.f32.xlu1 %v862_v11  ;;  %v859_v12 = vsel %vm186_vm6, %v2625_v10, 0.0 }
 0x462   :  { %860 = vadd.xlane.f32.xlu0 %v859_v12 }
 0x472   :  { %1413 = vrot.lane.b32.xlu1 %v2533_v56, %s2415_s10 }
 0x476   :  { %1579 = vrot.lane.b32.xlu1 %v2475_v16, %s2416_s11 }
 0x478   :  { %1337 = vrot.lane.b32.xlu0 %v2525_v53, %s2415_s10 }
 0x47a   :  { %1749 = vrot.lane.b32.xlu1 %v2463_v14, %s2416_s11 }
 0x47c   :  { %1494 = vrot.lane.b32.xlu0 %v2484_v17, %s2416_s11 }
 0x480   :  { %1664 = vrot.lane.b32.xlu0 %v2468_v15, %s2416_s11 }
 0x486   :  { %v843_v20 = vpop.xlane.xlu0 %842 }
 0x487   :  { %2385 = vrcp.f32 %v843_v20 }
 0x48e   :  { %v846_v22 = vpop.xlane.xlu1 %845 }
 0x48f   :  { %2387 = vrcp.f32 %v846_v22 }
 0x494   :  { %v2386_v56 = vpop.eup %2385 }
 0x495   :  { %v873_v16 = vmul.f32 %v2386_v56, %v2603_v36 }
 0x497   :  { %2266 = vmatmul.mubr.msk.f32.vlgmr.msra.gmra.mxu0 %vm186_vm6, %v873_v16 }
 0x498   :  { %2274 = vmatpush3.msra.mxu0 %v1034_v13  ;;  %2275 = vmatprep.mubr.msk.f32.mxu0 %vm2410_vm5, %v2409_v45 }
 0x499   :  { %2283 = vmatprep.subr.mxu0 %v2409_v45 }
 0x49c   :  { %v2388_v14 = vpop.eup %2387 }
 0x49d   :  { %v874_v15 = vmul.f32 %v2388_v14, %v2607_v38 }
 0x49f   :  { %2271 = vmatmul.mubr.msk.f32.vlgmr.msra.gmra.mxu1 %vm186_vm6, %v874_v15 }
 0x4a0   :  { %2279 = vmatpush3.msra.mxu1 %v1110_v19  ;;  %2280 = vmatprep.mubr.msk.f32.mxu1 %vm2410_vm5, %v2409_v45 }
 0x4a1   :  { %2288 = vmatprep.subr.mxu1 %v2409_v45 }
 0x4de   :  { %v852_v17 = vpop.xlane.xlu1 %851 }
 0x4df   :  { %2389 = vrcp.f32 %v852_v17 }
 0x4e2   :  { %v849_v53 = vpop.xlane.xlu0 %848 }
 0x4e3   :  { %2391 = vrcp.f32 %v849_v53 }
 0x4e6   :  { %v858_v23 = vpop.xlane.xlu1 %857 }
 0x4e7   :  { %2393 = vrcp.f32 %v858_v23  ;;  %v855_v24 = vpop.xlane.xlu0 %854 }
 0x4e8   :  { %2395 = vrcp.f32 %v855_v24 }
 0x4ea   :  { %v864_v25 = vpop.xlane.xlu1 %863 }
 0x4eb   :  { %2397 = vrcp.f32 %v864_v25  ;;  %v861_v26 = vpop.xlane.xlu0 %860 }
 0x4ec   :  { %v2390_v27 = vpop.eup %2389  ;;  %2399 = vrcp.f32 %v861_v26 }
 0x4ed   :  { %v876_v28 = vmul.f32 %v2390_v27, %v2374_v63 }
 0x4ee   :  { %v1414_v36 = vpop.permute.xlu1 %1413 }
 0x4ef   :  { %2281 = vmatmul.mubr.msk.f32.vlgmr.msra.gmra.mxu1 %vm186_vm6, %v876_v28  ;;  %v1338_v31 = vpop.permute.xlu0 %1337 }
 0x4f0   :  { %v2392_v29 = vpop.eup %2391  ;;  %2289 = vmatpush3.msra.mxu1 %v1262_v21  ;;  %2290 = vmatprep.mubr.msk.f32.mxu1 %vm2410_vm5, %v2409_v45  ;;  %v2137_v21 = vld [vmem:[%s2764_s1 + $0x2] ss:$0 sm:$0xff] }
 0x4f1   :  { %v875_v30 = vmul.f32 %v2392_v29, %v2376_v3  ;;  %2298 = vmatprep.subr.mxu1 %v2409_v45 }
 0x4f2   :  { %v1580_v42 = vpop.permute.xlu1 %1579 }
 0x4f3   :  { %2276 = vmatmul.mubr.msk.f32.vlgmr.msra.gmra.mxu0 %vm186_vm6, %v875_v30  ;;  %v1495_v37 = vpop.permute.xlu0 %1494 }
 0x4f4   :  { %v2394_v32 = vpop.eup %2393  ;;  %2284 = vmatpush3.msra.mxu0 %v1186_v18  ;;  %2285 = vmatprep.mubr.msk.f32.mxu0 %vm2410_vm5, %v2409_v45 }
 0x4f5   :  { %v2396_v33 = vpop.eup %2395  ;;  %2293 = vmatprep.subr.mxu0 %v2409_v45  ;;  %v878_v34 = vmul.f32 %v2394_v32, %v2615_v5 }
 0x4f6   :  { %v877_v35 = vmul.f32 %v2396_v33, %v2617_v6  ;;  %v1750_v44 = vpop.permute.xlu1 %1749 }
 0x4f7   :  { %2291 = vmatmul.mubr.msk.f32.vlgmr.msra.gmra.mxu1 %vm186_vm6, %v878_v34  ;;  %v1665_v43 = vpop.permute.xlu0 %1664 }
 0x4f8   :  { %v2398_v38 = vpop.eup %2397  ;;  %2286 = vmatmul.mubr.msk.f32.vlgmr.msra.gmra.mxu0 %vm186_vm6, %v877_v35  ;;  %2299 = vmatpush3.msra.mxu1 %v1414_v36  ;;  %v1910_v36 = vld [vmem:[%s2763_s2 + $0x38] sm:$0xff] }
 0x4f9   :  { %v2400_v39 = vpop.eup %2399  ;;  %2294 = vmatpush3.msra.mxu0 %v1338_v31  ;;  %2295 = vmatprep.mubr.msk.f32.mxu0 %vm2410_vm5, %v2409_v45  ;;  %v880_v40 = vmul.f32 %v2398_v38, %v2623_v9  ;;  %v1908_v38 = vld [vmem:[%s2763_s2 + $0x18] sm:$0xff] }
 0x4fa   :  { %2300 = vmatprep.mubr.msk.f32.mxu1 %vm2410_vm5, %v2409_v45  ;;  %v879_v41 = vmul.f32 %v2400_v39, %v2625_v10  ;;  %2303 = vmatprep.subr.mxu0 %v1495_v37  ;;  %v1907_v39 = vld [vmem:[%s2763_s2 + $0x8] sm:$0xff] }
 0x4fb   :  { %2301 = vmatmul.mubr.msk.f32.vlgmr.msra.gmra.mxu1 %vm186_vm6, %v880_v40  ;;  %2308 = vmatprep.subr.mxu1 %v1580_v42  ;;  %v2005_v40 = vld [vmem:[%s2765_s3 + $0x38] sm:$0xff] }
 0x4fc   :  { %2296 = vmatmul.mubr.msk.f32.vlgmr.msra.gmra.mxu0 %vm186_vm6, %v879_v41  ;;  %2309 = vmatpush3.msra.mxu1 %v1580_v42  ;;  %v2004_v41 = vld [vmem:[%s2765_s3 + $0x30] sm:$0xff]  ;;  %v2003_v42 = vld [vmem:[%s2765_s3 + $0x28] sm:$0xff] }
 0x4fd   :  { %2304 = vmatpush3.msra.mxu0 %v1495_v37  ;;  %2318 = vmatprep.subr.mxu1 %v1750_v44  ;;  %v1909_v37 = vld [vmem:[%s2763_s2 + $0x28] sm:$0xff] }
 0x4fe   :  { %2313 = vmatprep.subr.mxu0 %v1665_v43 }
 0x557   :  { %v953_v46 = vpop.f32.mrf.mxu0 }
 0x558   :  { %2305 = vmatprep.mubr.msk.f32.mxu0 %vm186_vm6, %v953_v46 }
 0x559   :  { %v2267_v47 = vpop.f32.mrf.mxu0 }
 0x55f   :  { %v1029_v45 = vpop.f32.mrf.mxu1 }
 0x560   :  { %2306 = vmatmul.mubr.msk.f32.vlgmr.msra.gmra.mxu0 %vm186_vm6, %v1029_v45 }
 0x561   :  { %v2272_v48 = vpop.f32.mrf.mxu1  ;;  %2314 = vmatpush3.msra.mxu0 %v1665_v43  ;;  %v2002_v43 = vld [vmem:[%s2765_s3 + $0x20] sm:$0xff] }
 0x562   :  { %2323 = vmatprep.subr.mxu0 %v1910_v36 }
 0x5af   :  { %v1181_v49 = vpop.f32.mrf.mxu1 }
 0x5b1   :  { %v2282_v50 = vpop.f32.mrf.mxu1 }
 0x5b3   :  { %v1105_v51 = vpop.f32.mrf.mxu0 }
 0x5b4   :  { %2310 = vmatprep.mubr.msk.f32.mxu1 %vm186_vm6, %v1105_v51 }
 0x5b5   :  { %v2277_v52 = vpop.f32.mrf.mxu0  ;;  %2311 = vmatmul.mubr.msk.f32.vlgmr.msra.gmra.mxu1 %vm186_vm6, %v1181_v49 }
 0x5b6   :  { %2319 = vmatpush3.msra.mxu1 %v1750_v44 }
 0x5b7   :  { %v1333_v54 = vpop.f32.mrf.mxu1  ;;  %2334 = vmatprep.subr.mxu1 %v2005_v40 }
 0x5b8   :  { %v1257_v55 = vpop.f32.mrf.mxu0 }
 0x5b9   :  { %2315 = vmatprep.mubr.msk.f32.mxu0 %vm186_vm6, %v1257_v55  ;;  %v2292_v57 = vpop.f32.mrf.mxu1 }
 0x5ba   :  { %v2287_v58 = vpop.f32.mrf.mxu0  ;;  %2316 = vmatmul.mubr.msk.f32.vlgmr.msra.gmra.mxu0 %vm186_vm6, %v1333_v54 }
 0x5bb   :  { %v1485_v59 = vpop.f32.mrf.mxu1  ;;  %2324 = vmatpush3.msra.mxu0 %v1910_v36 }
 0x5bc   :  { %v1409_v60 = vpop.f32.mrf.mxu0  ;;  %2325 = vmatprep.subr.mxu0 %v1909_v37 }
 0x5bd   :  { %2320 = vmatprep.mubr.msk.f32.mxu1 %vm186_vm6, %v1409_v60  ;;  %v2302_v61 = vpop.f32.mrf.mxu1  ;;  %2326 = vmatpush3.msra.mxu0 %v1909_v37 }
 0x5be   :  { %v2297_v62 = vpop.f32.mrf.mxu0  ;;  %2321 = vmatmul.mubr.msk.f32.vlgmr.msra.gmra.mxu1 %vm186_vm6, %v1485_v59  ;;  %2327 = vmatprep.subr.mxu0 %v1908_v38 }
 0x5bf   :  { %2328 = vmatpush3.msra.mxu0 %v1908_v38  ;;  %2335 = vmatpush3.msra.mxu1 %v2005_v40  ;;  %v2138_v62 = vld [vmem:[%s2764_s1 + $0x3] ss:$0 sm:$0xff] }
 0x5c0   :  { %2329 = vmatprep.subr.mxu0 %v1907_v39  ;;  %2336 = vmatprep.subr.mxu1 %v2004_v41 }
 0x5c1   :  { %2330 = vmatpush3.msra.mxu0 %v1907_v39  ;;  %2337 = vmatpush3.msra.mxu1 %v2004_v41 }
 0x5c2   :  { %2338 = vmatprep.subr.mxu1 %v2003_v42 }
 0x5c3   :  { %2339 = vmatpush3.msra.mxu1 %v2003_v42 }
 0x5c4   :  { %2340 = vmatprep.subr.mxu1 %v2002_v43 }
 0x5c5   :  { %2341 = vmatpush3.msra.mxu1 %v2002_v43 }
 0x620   :  { %v2307_v63 = vpop.f32.mrf.mxu0 }
 0x621   :  { %v1840_v7 = vsel %vm27_vm0, %v2307_v63, 0.0 }
 0x622   :  { %v1569_v3 = vpop.f32.mrf.mxu0 }
 0x623   :  { %v1833_v12 = vsel %vm27_vm0, %v1569_v3, 0.0  ;;  %v2139_v3 = vld [vmem:[%s2764_s1 + $0x4] ss:$0 sm:$0xff] }
 0x675   :  { %v2312_v2 = vpop.f32.mrf.mxu1 }
 0x676   :  { %v1841_v5 = vsel %vm27_vm0, %v2312_v2, 0.0 }
 0x677   :  { %v1654_v4 = vpop.f32.mrf.mxu1  ;;  %v1842_v10 = vadd.f32 %v1841_v5, %v1840_v7 }
 0x678   :  { %v1834_v8 = vsel %vm27_vm0, %v1654_v4, 0.0 }
 0x679   :  { %v1835_v18 = vadd.f32 %v1834_v8, %v1833_v12  ;;  %v1999_v12 = vld [vmem:[%s2765_s3 + $0x8] sm:$0xff] }
 0x67a   :  { %v2317_v6 = vpop.f32.mrf.mxu0 }
 0x67b   :  { %v1843_v9 = vsel %vm27_vm0, %v2317_v6, 0.0 }
 0x67c   :  { %v1739_v11 = vpop.f32.mrf.mxu0  ;;  %v1844_v19 = vadd.f32 %v1843_v9, %v1842_v10  ;;  %v2001_v10 = vld [vmem:[%s2765_s3 + $0x18] sm:$0xff] }
 0x67d   :  { %v1836_v13 = vsel %vm27_vm0, %v1739_v11, 0.0  ;;  %2342 = vmatprep.subr.mxu1 %v2001_v10  ;;  %v2000_v11 = vld [vmem:[%s2765_s3 + $0x10] sm:$0xff] }
 0x67e   :  { %v2322_v20 = vpop.f32.mrf.mxu1  ;;  %v1837_v56 = vadd.f32 %v1836_v13, %v1835_v18  ;;  %2343 = vmatpush3.msra.mxu1 %v2001_v10  ;;  %v1998_v13 = vld [vmem:[%s2765_s3] sm:$0xff] }
 0x67f   :  { %v1845_v22 = vsel %vm27_vm0, %v2322_v20, 0.0  ;;  %2344 = vmatprep.subr.mxu1 %v2000_v11  ;;  %v2140_v18 = vld [vmem:[%s2764_s1 + $0x6] ss:$0 sm:$0xff] }
 0x680   :  { %v1846_v16 = vadd.f32 %v1845_v22, %v1844_v19  ;;  %v1824_v14 = vpop.f32.mrf.mxu1  ;;  %2345 = vmatpush3.msra.mxu1 %v2000_v11 }
 0x681   :  { %v1838_v15 = vsel %vm27_vm0, %v1824_v14, 0.0  ;;  %2346 = vmatprep.subr.mxu1 %v1999_v12  ;;  %v2143_v14 = vld [vmem:[%s2764_s1 + $0x5] ss:$0 sm:$0xff] }
 0x682   :  { %v1852_v17 = vadd.f32 %v2137_v21, %v1846_v16  ;;  %v1839_v53 = vadd.f32 %v1838_v15, %v1837_v56  ;;  %2347 = vmatpush3.msra.mxu1 %v1999_v12 }
 0x683   :  { %2348 = vmatprep.subr.mxu1 %v1998_v13 }
 0x684   :  { %v1851_v23 = vadd.f32 %v2137_v21, %v1839_v53  ;;  %v2689_v24 = vadd.f32 %v1852_v17, %v2450_v1  ;;  %2349 = vmatpush3.msra.mxu1 %v1998_v13 }
 0x686   :  { %v1858_v25 = vsel %vm27_vm0, %v2689_v24, 0.0  ;;  %v2694_v26 = vadd.f32 %v1851_v23, %v2445_v0 }
 0x687   :  { %1859 = vadd.xlane.f32.xlu1 %v1858_v25 }
 0x688   :  { %v1855_v27 = vsel %vm27_vm0, %v2694_v26, 0.0 }
 0x689   :  { %1856 = vadd.xlane.f32.xlu0 %v1855_v27 }
 0x710   :  { %v1860_v28 = vpop.xlane.xlu1 %1859 }
 0x711   :  { %v1862_v29 = vmul.f32 0.03125, %v1860_v28 }
 0x712   :  { %v1857_v30 = vpop.xlane.xlu0 %1856 }
 0x713   :  { %v1861_v31 = vmul.f32 0.03125, %v1857_v30  ;;  %v1864_v32 = vsub.f32 %v2689_v24, %v1862_v29 }
 0x715   :  { %v1863_v1 = vsub.f32 %v2694_v26, %v1861_v31  ;;  %v1866_v35 = vmul.f32 %v1864_v32, %v1864_v32  ;;  %v1880_v5 = vmul.f32 %v2138_v62, %v1864_v32 }
 0x717   :  { %v1865_v33 = vmul.f32 %v1863_v1, %v1863_v1  ;;  %v1870_v0 = vsel %vm27_vm0, %v1866_v35, 0.0  ;;  %v1879_v63 = vmul.f32 %v2138_v62, %v1863_v1 }
 0x719   :  { %v1867_v34 = vsel %vm27_vm0, %v1865_v33, 0.0 }
 0x71a   :  { %1868 = vadd.xlane.f32.xlu0 %v1867_v34 }
 0x71e   :  { %1871 = vadd.xlane.f32.xlu0 %v1870_v0 }
 0x7a3   :  { %v1869_v44 = vpop.xlane.xlu0 %1868 }
 0x7a4   :  { %v1873_v46 = vmul.f32 0.032258064, %v1869_v44 }
 0x7a6   :  { %2401 = vrsqrt.f32 %v1873_v46  ;;  %vm1883_vm7 = vcmp.eq.f32.partialorder %v1873_v46, inf  ;;  %v1886_v50 = vand.u32 2147483648, %v1873_v46  ;;  %vm1885_vm8 = vcmp.eq.f32.partialorder %v1873_v46, 0.0 }
 0x7a7   :  { %v1872_v47 = vpop.xlane.xlu0 %1871 }
 0x7a8   :  { %v1874_v45 = vmul.f32 0.032258064, %v1872_v47 }
 0x7aa   :  { %2403 = vrsqrt.f32 %v1874_v45  ;;  %vm1890_vm9 = vcmp.eq.f32.partialorder %v1874_v45, inf  ;;  %v1893_v58 = vand.u32 2147483648, %v1874_v45  ;;  %vm1892_vm10 = vcmp.eq.f32.partialorder %v1874_v45, 0.0 }
 0x7b3   :  { %v2402_v48 = vpop.eup %2401 }
 0x7b4   :  { %v1882_v49 = vmul.f32 %v2402_v48, %v1873_v46 }
 0x7b6   :  { %v1884_v51 = vsel %vm1883_vm7, %v1873_v46, %v1882_v49 }
 0x7b7   :  { %v2404_v52 = vpop.eup %2403  ;;  %v1887_v54 = vsel %vm1885_vm8, %v1886_v50, %v1884_v51 }
 0x7b8   :  { %v1895_v55 = vadd.f32 1e-06, %v1887_v54  ;;  %v1889_v57 = vmul.f32 %v2404_v52, %v1874_v45 }
 0x7ba   :  { %2405 = vrcp.f32 %v1895_v55  ;;  %v1891_v59 = vsel %vm1890_vm9, %v1874_v45, %v1889_v57 }
 0x7bb   :  { %v1894_v60 = vsel %vm1892_vm10, %v1893_v58, %v1891_v59 }
 0x7bc   :  { %v1896_v61 = vadd.f32 1e-06, %v1894_v60 }
 0x7be   :  { %2407 = vrcp.f32 %v1896_v61 }
 0x7c7   :  { %v2406_v2 = vpop.eup %2405 }
 0x7c8   :  { %v1898_v4 = vmul.f32 %v2406_v2, %v1879_v63 }
 0x7ca   :  { %v1905_v6 = vadd.f32 %v2139_v3, %v1898_v4 }
 0x7cb   :  { %v2408_v7 = vpop.eup %2407 }
 0x7cc   :  { %v1900_v8 = vmul.f32 %v2408_v7, %v1880_v5  ;;  %2331 = vmatprep.mubr.msk.f32.mxu0 %vm27_vm0, %v1905_v6 }
 0x7ce   :  { %v1906_v9 = vadd.f32 %v2139_v3, %v1900_v8 }
 0x7d0   :  { %2332 = vmatmul.mubr.msk.f32.vlgmr.msra.gmra.mxu0 %vm27_vm0, %v1906_v9 }
 0x890   :  { %v2333_v19 = vpop.f32.mrf.mxu0 }
 0x891   :  { %v1993_v20 = vadd.f32 %v2333_v19, %v2140_v18 }
 0x892   :  { %v1987_v21 = vpop.f32.mrf.mxu0 }
 0x893   :  { %v1988_v22 = vadd.f32 %v2140_v18, %v1987_v21  ;;  %v1997_v16 = vmax.f32 %v1993_v20, 0.0 }
 0x895   :  { %v1996_v56 = vmax.f32 %v1988_v22, 0.0 }
 0x897   :  { %2350 = vmatprep.mubr.msk.f32.mxu1 %vm2010_vm11, %v1996_v56 }
 0x898   :  { %2351 = vmatmul.mubr.msk.f32.vlgmr.msra.gmra.mxu1 %vm2010_vm11, %v1997_v16 }
 0x958   :  { %v2352_v15 = vpop.f32.mrf.mxu1 }
 0x959   :  { %v2089_v17 = vadd.f32 %v2352_v15, %v2143_v14 }
 0x95a   :  { %v2083_v53 = vpop.f32.mrf.mxu1 }
 0x95b   :  { %v2093_v23 = vadd.f32 %v2089_v17, %v2689_v24  ;;  %v2084_v25 = vadd.f32 %v2143_v14, %v2083_v53 }
 0x95d   :  { %2095 = vst.msk [vmem:[%s2766_s4 + $0x8] sm:$0xff] %vm27_vm0, %v2093_v23  ;;  %v2092_v27 = vadd.f32 %v2084_v25, %v2694_v26 }
 0x95f   :  { %2094 = vst.msk [vmem:[%s2766_s4] sm:$0xff] %vm27_vm0, %v2092_v27 }

</bundles_post_ra>
